<compile_context>
chip_gen: v5e
topology: v5e:2x2
jax: 0.10.0
libtpu: 0.0.40
codegen_flags: <defaults>
</compile_context>

<pallas_src>
import jax
import jax.numpy as jnp
from jax.experimental import pallas as pl
from jax.experimental.pallas import tpu as pltpu

LANE = 128


def _make_kernel(T: int, B: int, H: int, hw: int):
    """Single-invocation kernel: whole sequence resident, time loop unrolled."""

    def kernel(x_ref, wih_ref, whh_ref, bg_ref, w1_ref, b1_ref, whw_ref,
               out_ref, xg_ref):
        # x_ref:   (T*B, Vp)  f32   seq-major, lane-padded input
        # wih_ref: (Vp, 4H)   bf16  W_ih^T (zero-padded rows)
        # whh_ref: (H, 4H)    bf16  W_hh^T
        # bg_ref:  (1, 4H)    f32   b_ih + b_hh
        # w1_ref:  (H, Vp)    bf16  linear1 weight^T (zero-padded cols)
        # b1_ref:  (1, Vp)    f32   linear1 bias (+ highway bias folded), padded
        # whw_ref: (hw,)      f32   highway weights in SMEM (scalars)
        # xg_ref:  (T*B, 4H)  f32   VMEM scratch for the hoisted input projection

        # --- 1) Input projection for ALL timesteps in one bf16 MXU matmul,
        #        staged in VMEM scratch (keeps its 16 vregs out of the loop's
        #        live range).  x is read straight from the ref, not kept live.
        xg_ref[...] = (
            jnp.dot(x_ref[...].astype(jnp.bfloat16), wih_ref[...],
                    preferred_element_type=jnp.float32)
            + bg_ref[...])                                     # (T*B, 4H)

        whh = whh_ref[...]                                     # (H, 4H) bf16, resident

        # --- 2) LSTM recurrence, fully unrolled (T small & static): one small
        #        bf16 matmul per step, x-projection loaded from scratch.
        h = jnp.zeros((B, H), jnp.float32)
        c = jnp.zeros((B, H), jnp.float32)
        for t in range(T):
            g_x = xg_ref[pl.ds(t * B, B), :]                   # (B, 4H) from scratch
            gates = g_x + jnp.dot(h.astype(jnp.bfloat16), whh,
                                  preferred_element_type=jnp.float32)
            # Full-vreg EUP activations (EUP slot is essentially free), then
            # slice the per-gate quarters.
            sg = jax.nn.sigmoid(gates)                         # (B, 4H)
            th = jnp.tanh(gates)                               # (B, 4H)
            i_g = sg[:, 0 * H:1 * H]
            f_g = sg[:, 1 * H:2 * H]
            g_g = th[:, 2 * H:3 * H]
            o_g = sg[:, 3 * H:4 * H]
            c = f_g * c + i_g * g_g
            h = o_g * jnp.tanh(c)

        # --- 3) Head: linear1(h_T) + highway + sigmoid, all lane-dense (B, Vp).
        out = (jnp.dot(h.astype(jnp.bfloat16), w1_ref[...],
                       preferred_element_type=jnp.float32)
               + b1_ref[...])                                  # hwy bias already in b1
        if hw > 0:
            # Highway depends only on x -> computed once here, re-reading the
            # needed rows from the VMEM ref (x was never kept live).
            for k in range(hw):
                t = T - hw + k
                out = out + whw_ref[k] * x_ref[pl.ds(t * B, B), :]
        out_ref[...] = jax.nn.sigmoid(out)                     # output_fun == 'sigmoid'

    return kernel


def prepare_params(params, variables, hw):
    """One-time padding / bf16 casting / bias folding (hoisted out of the call path)."""
    V = variables
    Vp = pl.cdiv(V, LANE) * LANE
    H = params["whh_t"].shape[0]
    wih_p = jnp.pad(params["wih_t"], ((0, Vp - V), (0, 0))).astype(jnp.bfloat16)
    w1_p = jnp.pad(params["w1_t"], ((0, 0), (0, Vp - V))).astype(jnp.bfloat16)
    b1 = params["b1"]
    if hw > 0:
        b1 = b1 + params["b_hw"][0]              # fold scalar highway bias into b1
    b1_p = jnp.pad(b1, ((0, 0), (0, Vp - V)))
    w_hw = params["w_hw"] if hw > 0 else jnp.zeros((1,), jnp.float32)
    return {
        "wih_p": wih_p,                          # (Vp, 4H) bf16
        "whh": params["whh_t"].astype(jnp.bfloat16),   # (H, 4H) bf16
        "bg": params["bg"],                      # (1, 4H)  f32
        "w1_p": w1_p,                            # (H, Vp)  bf16
        "b1_p": b1_p,                            # (1, Vp)  f32
        "w_hw": w_hw,                            # (hw,)    f32 (SMEM)
        "V": V, "Vp": Vp, "H": H,
    }


def rnn_model_forward(x, prep, hw):
    """x: (B, T, V) float32.  Returns (B, V) float32 (eval-mode forward)."""
    B, T, V = x.shape
    Vp, H = prep["Vp"], prep["H"]

    # Seq-major view == x.permute(1, 0, 2) in PyTorch, flattened over (T, B).
    # Only x is padded per call; all parameter prep was hoisted to prepare_params.
    x_seq = jnp.transpose(x, (1, 0, 2)).reshape(T * B, V)
    x_p = jnp.pad(x_seq, ((0, 0), (0, Vp - V)))

    out_p = pl.pallas_call(
        _make_kernel(T, B, H, hw),
        out_shape=jax.ShapeDtypeStruct((B, Vp), jnp.float32),
        in_specs=[
            pl.BlockSpec(memory_space=pltpu.MemorySpace.VMEM),   # x (T*B, Vp)
            pl.BlockSpec(memory_space=pltpu.MemorySpace.VMEM),   # W_ih^T (Vp, 4H)
            pl.BlockSpec(memory_space=pltpu.MemorySpace.VMEM),   # W_hh^T (H, 4H)
            pl.BlockSpec(memory_space=pltpu.MemorySpace.VMEM),   # b_ih + b_hh (1, 4H)
            pl.BlockSpec(memory_space=pltpu.MemorySpace.VMEM),   # W_lin1^T (H, Vp)
            pl.BlockSpec(memory_space=pltpu.MemorySpace.VMEM),   # b_lin1 + b_hw (1, Vp)
            pl.BlockSpec(memory_space=pltpu.MemorySpace.SMEM),   # highway weights (hw,)
        ],
        out_specs=pl.BlockSpec(memory_space=pltpu.MemorySpace.VMEM),
        scratch_shapes=[pltpu.VMEM((T * B, 4 * H), jnp.float32)],  # staged xg
        compiler_params=pltpu.CompilerParams(
            # Explicit scoped-VMEM budget (safe on v5e/v6e/v7x); raise when
            # scaling T/B/H past the current <1 MiB footprint.
            vmem_limit_bytes=32 * 1024 * 1024,
        ),
    )(x_p, prep["wih_p"], prep["whh"], prep["bg"], prep["w1_p"], prep["b1_p"],
      prep["w_hw"])
    return out_p[:, :V]


def reference_forward(x, params, hw):
    """Pure-JAX reference mirroring the PyTorch forward (eval mode)."""
    B, T, V = x.shape
    hid = params["whh_t"].shape[0]
    wih_t, whh_t, bg = params["wih_t"], params["whh_t"], params["bg"][0]

    def step(carry, x_t):
        h, c = carry
        gates = x_t @ wih_t + h @ whh_t + bg
        i = jax.nn.sigmoid(gates[:, :hid])
        f = jax.nn.sigmoid(gates[:, hid:2 * hid])
        g = jnp.tanh(gates[:, 2 * hid:3 * hid])
        o = jax.nn.sigmoid(gates[:, 3 * hid:])
        c = f * c + i * g
        h = o * jnp.tanh(c)
        return (h, c), None

    h0 = jnp.zeros((B, hid), jnp.float32)
    c0 = jnp.zeros((B, hid), jnp.float32)
    (h, _), _ = jax.lax.scan(step, (h0, c0), jnp.transpose(x, (1, 0, 2)))
    out = h @ params["w1_t"] + params["b1"][0]
    if hw > 0:
        z = x[:, -hw:, :]                                        # (B, hw, V)
        z = jnp.einsum("btv,t->bv", z, params["w_hw"]) + params["b_hw"][0]
        out = out + z
    return jax.nn.sigmoid(out)


def init_params(key, variables, hid, hw):
    ks = jax.random.split(key, 8)
    s = 1.0 / jnp.sqrt(jnp.float32(hid))
    u = lambda k, shape: jax.random.uniform(k, shape, jnp.float32, -s, s)
    wih = u(ks[0], (4 * hid, variables))       # PyTorch weight_ih_l0
    whh = u(ks[1], (4 * hid, hid))             # PyTorch weight_hh_l0
    b_ih = u(ks[2], (4 * hid,))
    b_hh = u(ks[3], (4 * hid,))
    w1 = u(ks[4], (variables, hid))            # linear1.weight
    b1 = u(ks[5], (variables,))
    w_hw = u(ks[6], (hw,))                     # highway.weight (1, hw) -> (hw,)
    b_hw = u(ks[7], (1,))                      # highway.bias
    return {
        "wih_t": wih.T,                        # (V, 4H)
        "whh_t": whh.T,                        # (H, 4H)
        "bg": (b_ih + b_hh)[None, :],          # (1, 4H)
        "w1_t": w1.T,                          # (H, V)
        "b1": b1[None, :],                     # (1, V)
        "w_hw": w_hw,                          # (hw,)
        "b_hw": b_hw,                          # (1,)
    }


if __name__ == "__main__":
    # Small, deterministic config consistent with the module's forward():
    #   batch=8, window=8 (seq), variables=8, hidRNN=32, highway_window=4
    B, T, V, HID, HW = 8, 8, 8, 32, 4

    key = jax.random.PRNGKey(0)
    kx, kp = jax.random.split(key)
    x = jax.random.normal(kx, (B, T, V), jnp.float32)
    params = init_params(kp, V, HID, HW)
    prep = prepare_params(params, V, HW)       # one-time padding / bf16 casts

    out = jax.block_until_ready(rnn_model_forward(x, prep, HW))
    ref = jax.block_until_ready(reference_forward(x, params, HW))

    assert out.shape == (B, V)
    # Kernel matmuls are pinned to single-pass bf16 (MXU native); the f32
    # reference may run at higher precision, so allow bf16-level drift.
    max_err = float(jnp.max(jnp.abs(out - ref)))
    assert max_err < 2e-2, f"max abs diff = {max_err}"

    print("KERNEL_OK")
</pallas_src>

<mosaic_0001>
module attributes {stable_mosaic.version = 11 : i64} {
  func.func @kernel(%arg0: memref<64x128xf32, #tpu.memory_space<vmem>>, %arg1: memref<128x128xbf16, #tpu.memory_space<vmem>>, %arg2: memref<32x128xbf16, #tpu.memory_space<vmem>>, %arg3: memref<1x128xf32, #tpu.memory_space<vmem>>, %arg4: memref<32x128xbf16, #tpu.memory_space<vmem>>, %arg5: memref<1x128xf32, #tpu.memory_space<vmem>>, %arg6: memref<4xf32, #tpu.memory_space<smem>>, %arg7: memref<8x128xf32, #tpu.memory_space<vmem>>, %arg8: memref<64x128xf32, #tpu.memory_space<vmem>>) attributes {dimension_semantics = [], scalar_prefetch = 0 : i64, scratch_operands = 1 : i64, tpu.core_type = #tpu.core_type<tc>} {
    %c0 = arith.constant 0 : index
    %c0_0 = arith.constant 0 : index
    %0 = vector.load %arg0[%c0, %c0_0] : memref<64x128xf32, #tpu.memory_space<vmem>>, vector<64x128xf32>
    %1 = arith.truncf %0 : vector<64x128xf32> to vector<64x128xbf16>
    %c0_1 = arith.constant 0 : index
    %c0_2 = arith.constant 0 : index
    %2 = vector.load %arg1[%c0_1, %c0_2] : memref<128x128xbf16, #tpu.memory_space<vmem>>, vector<128x128xbf16>
    %cst = arith.constant dense<0.000000e+00> : vector<64x128xf32>
    %3 = tpu.matmul %1, %2, %cst {dimension_numbers = #tpu.dot_dimension_numbers<[1], [0], [0], [1], [0, 0, 1, 1], [], []>} : vector<64x128xbf16>, vector<128x128xbf16>, vector<64x128xf32> -> vector<64x128xf32>
    %c0_3 = arith.constant 0 : index
    %c0_4 = arith.constant 0 : index
    %4 = vector.load %arg3[%c0_3, %c0_4] : memref<1x128xf32, #tpu.memory_space<vmem>>, vector<1x128xf32>
    %5 = vector.broadcast %4 : vector<1x128xf32> to vector<64x128xf32>
    %6 = arith.addf %3, %5 : vector<64x128xf32>
    %c0_5 = arith.constant 0 : index
    %c0_6 = arith.constant 0 : index
    %7 = vector.load %arg8[%c0_5, %c0_6] : memref<64x128xf32, #tpu.memory_space<vmem>>, vector<64x128xf32>
    tpu.vector_store %arg8[%c0_5, %c0_6], %6 {strides = array<i32>} : memref<64x128xf32, #tpu.memory_space<vmem>>, vector<64x128xf32>,
    %c0_7 = arith.constant 0 : index
    %c0_8 = arith.constant 0 : index
    %8 = vector.load %arg2[%c0_7, %c0_8] : memref<32x128xbf16, #tpu.memory_space<vmem>>, vector<32x128xbf16>
    %cst_9 = arith.constant 0.000000e+00 : f32
    %9 = vector.broadcast %cst_9 : f32 to vector<8x32xf32>
    %cst_10 = arith.constant 0.000000e+00 : f32
    %10 = vector.broadcast %cst_10 : f32 to vector<8x32xf32>
    %c0_11 = arith.constant 0 : index
    %c0_12 = arith.constant 0 : index
    %11 = vector.load %arg8[%c0_11, %c0_12] : memref<64x128xf32, #tpu.memory_space<vmem>>, vector<8x128xf32>
    %12 = arith.truncf %9 : vector<8x32xf32> to vector<8x32xbf16>
    %cst_13 = arith.constant dense<0.000000e+00> : vector<8x128xf32>
    %13 = tpu.matmul %12, %8, %cst_13 {dimension_numbers = #tpu.dot_dimension_numbers<[1], [0], [0], [1], [0, 0, 1, 1], [], []>} : vector<8x32xbf16>, vector<32x128xbf16>, vector<8x128xf32> -> vector<8x128xf32>
    %14 = arith.addf %11, %13 : vector<8x128xf32>
    %15 = arith.negf %14 : vector<8x128xf32>
    %16 = math.exp %15 : vector<8x128xf32>
    %cst_14 = arith.constant 1.000000e+00 : f32
    %17 = vector.broadcast %cst_14 : f32 to vector<8x128xf32>
    %18 = arith.addf %17, %16 : vector<8x128xf32>
    %19 = arith.divf %17, %18 : vector<8x128xf32>
    %20 = math.tanh %14 : vector<8x128xf32>
    %21 = vector.extract_strided_slice %19 {offsets = [0, 0], sizes = [8, 32], strides = [1, 1]} : vector<8x128xf32> to vector<8x32xf32>
    %22 = vector.extract_strided_slice %19 {offsets = [0, 32], sizes = [8, 32], strides = [1, 1]} : vector<8x128xf32> to vector<8x32xf32>
    %23 = vector.extract_strided_slice %20 {offsets = [0, 64], sizes = [8, 32], strides = [1, 1]} : vector<8x128xf32> to vector<8x32xf32>
    %24 = vector.extract_strided_slice %19 {offsets = [0, 96], sizes = [8, 32], strides = [1, 1]} : vector<8x128xf32> to vector<8x32xf32>
    %25 = arith.mulf %22, %10 : vector<8x32xf32>
    %26 = arith.mulf %21, %23 : vector<8x32xf32>
    %27 = arith.addf %25, %26 : vector<8x32xf32>
    %28 = math.tanh %27 : vector<8x32xf32>
    %29 = arith.mulf %24, %28 : vector<8x32xf32>
    %c8 = arith.constant 8 : index
    %c0_15 = arith.constant 0 : index
    %30 = vector.load %arg8[%c8, %c0_15] : memref<64x128xf32, #tpu.memory_space<vmem>>, vector<8x128xf32>
    %31 = arith.truncf %29 : vector<8x32xf32> to vector<8x32xbf16>
    %cst_16 = arith.constant dense<0.000000e+00> : vector<8x128xf32>
    %32 = tpu.matmul %31, %8, %cst_16 {dimension_numbers = #tpu.dot_dimension_numbers<[1], [0], [0], [1], [0, 0, 1, 1], [], []>} : vector<8x32xbf16>, vector<32x128xbf16>, vector<8x128xf32> -> vector<8x128xf32>
    %33 = arith.addf %30, %32 : vector<8x128xf32>
    %34 = arith.negf %33 : vector<8x128xf32>
    %35 = math.exp %34 : vector<8x128xf32>
    %cst_17 = arith.constant 1.000000e+00 : f32
    %36 = vector.broadcast %cst_17 : f32 to vector<8x128xf32>
    %37 = arith.addf %36, %35 : vector<8x128xf32>
    %38 = arith.divf %36, %37 : vector<8x128xf32>
    %39 = math.tanh %33 : vector<8x128xf32>
    %40 = vector.extract_strided_slice %38 {offsets = [0, 0], sizes = [8, 32], strides = [1, 1]} : vector<8x128xf32> to vector<8x32xf32>
    %41 = vector.extract_strided_slice %38 {offsets = [0, 32], sizes = [8, 32], strides = [1, 1]} : vector<8x128xf32> to vector<8x32xf32>
    %42 = vector.extract_strided_slice %39 {offsets = [0, 64], sizes = [8, 32], strides = [1, 1]} : vector<8x128xf32> to vector<8x32xf32>
    %43 = vector.extract_strided_slice %38 {offsets = [0, 96], sizes = [8, 32], strides = [1, 1]} : vector<8x128xf32> to vector<8x32xf32>
    %44 = arith.mulf %41, %27 : vector<8x32xf32>
    %45 = arith.mulf %40, %42 : vector<8x32xf32>
    %46 = arith.addf %44, %45 : vector<8x32xf32>
    %47 = math.tanh %46 : vector<8x32xf32>
    %48 = arith.mulf %43, %47 : vector<8x32xf32>
    %c16 = arith.constant 16 : index
    %c0_18 = arith.constant 0 : index
    %49 = vector.load %arg8[%c16, %c0_18] : memref<64x128xf32, #tpu.memory_space<vmem>>, vector<8x128xf32>
    %50 = arith.truncf %48 : vector<8x32xf32> to vector<8x32xbf16>
    %cst_19 = arith.constant dense<0.000000e+00> : vector<8x128xf32>
    %51 = tpu.matmul %50, %8, %cst_19 {dimension_numbers = #tpu.dot_dimension_numbers<[1], [0], [0], [1], [0, 0, 1, 1], [], []>} : vector<8x32xbf16>, vector<32x128xbf16>, vector<8x128xf32> -> vector<8x128xf32>
    %52 = arith.addf %49, %51 : vector<8x128xf32>
    %53 = arith.negf %52 : vector<8x128xf32>
    %54 = math.exp %53 : vector<8x128xf32>
    %cst_20 = arith.constant 1.000000e+00 : f32
    %55 = vector.broadcast %cst_20 : f32 to vector<8x128xf32>
    %56 = arith.addf %55, %54 : vector<8x128xf32>
    %57 = arith.divf %55, %56 : vector<8x128xf32>
    %58 = math.tanh %52 : vector<8x128xf32>
    %59 = vector.extract_strided_slice %57 {offsets = [0, 0], sizes = [8, 32], strides = [1, 1]} : vector<8x128xf32> to vector<8x32xf32>
    %60 = vector.extract_strided_slice %57 {offsets = [0, 32], sizes = [8, 32], strides = [1, 1]} : vector<8x128xf32> to vector<8x32xf32>
    %61 = vector.extract_strided_slice %58 {offsets = [0, 64], sizes = [8, 32], strides = [1, 1]} : vector<8x128xf32> to vector<8x32xf32>
    %62 = vector.extract_strided_slice %57 {offsets = [0, 96], sizes = [8, 32], strides = [1, 1]} : vector<8x128xf32> to vector<8x32xf32>
    %63 = arith.mulf %60, %46 : vector<8x32xf32>
    %64 = arith.mulf %59, %61 : vector<8x32xf32>
    %65 = arith.addf %63, %64 : vector<8x32xf32>
    %66 = math.tanh %65 : vector<8x32xf32>
    %67 = arith.mulf %62, %66 : vector<8x32xf32>
    %c24 = arith.constant 24 : index
    %c0_21 = arith.constant 0 : index
    %68 = vector.load %arg8[%c24, %c0_21] : memref<64x128xf32, #tpu.memory_space<vmem>>, vector<8x128xf32>
    %69 = arith.truncf %67 : vector<8x32xf32> to vector<8x32xbf16>
    %cst_22 = arith.constant dense<0.000000e+00> : vector<8x128xf32>
    %70 = tpu.matmul %69, %8, %cst_22 {dimension_numbers = #tpu.dot_dimension_numbers<[1], [0], [0], [1], [0, 0, 1, 1], [], []>} : vector<8x32xbf16>, vector<32x128xbf16>, vector<8x128xf32> -> vector<8x128xf32>
    %71 = arith.addf %68, %70 : vector<8x128xf32>
    %72 = arith.negf %71 : vector<8x128xf32>
    %73 = math.exp %72 : vector<8x128xf32>
    %cst_23 = arith.constant 1.000000e+00 : f32
    %74 = vector.broadcast %cst_23 : f32 to vector<8x128xf32>
    %75 = arith.addf %74, %73 : vector<8x128xf32>
    %76 = arith.divf %74, %75 : vector<8x128xf32>
    %77 = math.tanh %71 : vector<8x128xf32>
    %78 = vector.extract_strided_slice %76 {offsets = [0, 0], sizes = [8, 32], strides = [1, 1]} : vector<8x128xf32> to vector<8x32xf32>
    %79 = vector.extract_strided_slice %76 {offsets = [0, 32], sizes = [8, 32], strides = [1, 1]} : vector<8x128xf32> to vector<8x32xf32>
    %80 = vector.extract_strided_slice %77 {offsets = [0, 64], sizes = [8, 32], strides = [1, 1]} : vector<8x128xf32> to vector<8x32xf32>
    %81 = vector.extract_strided_slice %76 {offsets = [0, 96], sizes = [8, 32], strides = [1, 1]} : vector<8x128xf32> to vector<8x32xf32>
    %82 = arith.mulf %79, %65 : vector<8x32xf32>
    %83 = arith.mulf %78, %80 : vector<8x32xf32>
    %84 = arith.addf %82, %83 : vector<8x32xf32>
    %85 = math.tanh %84 : vector<8x32xf32>
    %86 = arith.mulf %81, %85 : vector<8x32xf32>
    %c32 = arith.constant 32 : index
    %c0_24 = arith.constant 0 : index
    %87 = vector.load %arg8[%c32, %c0_24] : memref<64x128xf32, #tpu.memory_space<vmem>>, vector<8x128xf32>
    %88 = arith.truncf %86 : vector<8x32xf32> to vector<8x32xbf16>
    %cst_25 = arith.constant dense<0.000000e+00> : vector<8x128xf32>
    %89 = tpu.matmul %88, %8, %cst_25 {dimension_numbers = #tpu.dot_dimension_numbers<[1], [0], [0], [1], [0, 0, 1, 1], [], []>} : vector<8x32xbf16>, vector<32x128xbf16>, vector<8x128xf32> -> vector<8x128xf32>
    %90 = arith.addf %87, %89 : vector<8x128xf32>
    %91 = arith.negf %90 : vector<8x128xf32>
    %92 = math.exp %91 : vector<8x128xf32>
    %cst_26 = arith.constant 1.000000e+00 : f32
    %93 = vector.broadcast %cst_26 : f32 to vector<8x128xf32>
    %94 = arith.addf %93, %92 : vector<8x128xf32>
    %95 = arith.divf %93, %94 : vector<8x128xf32>
    %96 = math.tanh %90 : vector<8x128xf32>
    %97 = vector.extract_strided_slice %95 {offsets = [0, 0], sizes = [8, 32], strides = [1, 1]} : vector<8x128xf32> to vector<8x32xf32>
    %98 = vector.extract_strided_slice %95 {offsets = [0, 32], sizes = [8, 32], strides = [1, 1]} : vector<8x128xf32> to vector<8x32xf32>
    %99 = vector.extract_strided_slice %96 {offsets = [0, 64], sizes = [8, 32], strides = [1, 1]} : vector<8x128xf32> to vector<8x32xf32>
    %100 = vector.extract_strided_slice %95 {offsets = [0, 96], sizes = [8, 32], strides = [1, 1]} : vector<8x128xf32> to vector<8x32xf32>
    %101 = arith.mulf %98, %84 : vector<8x32xf32>
    %102 = arith.mulf %97, %99 : vector<8x32xf32>
    %103 = arith.addf %101, %102 : vector<8x32xf32>
    %104 = math.tanh %103 : vector<8x32xf32>
    %105 = arith.mulf %100, %104 : vector<8x32xf32>
    %c40 = arith.constant 40 : index
    %c0_27 = arith.constant 0 : index
    %106 = vector.load %arg8[%c40, %c0_27] : memref<64x128xf32, #tpu.memory_space<vmem>>, vector<8x128xf32>
    %107 = arith.truncf %105 : vector<8x32xf32> to vector<8x32xbf16>
    %cst_28 = arith.constant dense<0.000000e+00> : vector<8x128xf32>
    %108 = tpu.matmul %107, %8, %cst_28 {dimension_numbers = #tpu.dot_dimension_numbers<[1], [0], [0], [1], [0, 0, 1, 1], [], []>} : vector<8x32xbf16>, vector<32x128xbf16>, vector<8x128xf32> -> vector<8x128xf32>
    %109 = arith.addf %106, %108 : vector<8x128xf32>
    %110 = arith.negf %109 : vector<8x128xf32>
    %111 = math.exp %110 : vector<8x128xf32>
    %cst_29 = arith.constant 1.000000e+00 : f32
    %112 = vector.broadcast %cst_29 : f32 to vector<8x128xf32>
    %113 = arith.addf %112, %111 : vector<8x128xf32>
    %114 = arith.divf %112, %113 : vector<8x128xf32>
    %115 = math.tanh %109 : vector<8x128xf32>
    %116 = vector.extract_strided_slice %114 {offsets = [0, 0], sizes = [8, 32], strides = [1, 1]} : vector<8x128xf32> to vector<8x32xf32>
    %117 = vector.extract_strided_slice %114 {offsets = [0, 32], sizes = [8, 32], strides = [1, 1]} : vector<8x128xf32> to vector<8x32xf32>
    %118 = vector.extract_strided_slice %115 {offsets = [0, 64], sizes = [8, 32], strides = [1, 1]} : vector<8x128xf32> to vector<8x32xf32>
    %119 = vector.extract_strided_slice %114 {offsets = [0, 96], sizes = [8, 32], strides = [1, 1]} : vector<8x128xf32> to vector<8x32xf32>
    %120 = arith.mulf %117, %103 : vector<8x32xf32>
    %121 = arith.mulf %116, %118 : vector<8x32xf32>
    %122 = arith.addf %120, %121 : vector<8x32xf32>
    %123 = math.tanh %122 : vector<8x32xf32>
    %124 = arith.mulf %119, %123 : vector<8x32xf32>
    %c48 = arith.constant 48 : index
    %c0_30 = arith.constant 0 : index
    %125 = vector.load %arg8[%c48, %c0_30] : memref<64x128xf32, #tpu.memory_space<vmem>>, vector<8x128xf32>
    %126 = arith.truncf %124 : vector<8x32xf32> to vector<8x32xbf16>
    %cst_31 = arith.constant dense<0.000000e+00> : vector<8x128xf32>
    %127 = tpu.matmul %126, %8, %cst_31 {dimension_numbers = #tpu.dot_dimension_numbers<[1], [0], [0], [1], [0, 0, 1, 1], [], []>} : vector<8x32xbf16>, vector<32x128xbf16>, vector<8x128xf32> -> vector<8x128xf32>
    %128 = arith.addf %125, %127 : vector<8x128xf32>
    %129 = arith.negf %128 : vector<8x128xf32>
    %130 = math.exp %129 : vector<8x128xf32>
    %cst_32 = arith.constant 1.000000e+00 : f32
    %131 = vector.broadcast %cst_32 : f32 to vector<8x128xf32>
    %132 = arith.addf %131, %130 : vector<8x128xf32>
    %133 = arith.divf %131, %132 : vector<8x128xf32>
    %134 = math.tanh %128 : vector<8x128xf32>
    %135 = vector.extract_strided_slice %133 {offsets = [0, 0], sizes = [8, 32], strides = [1, 1]} : vector<8x128xf32> to vector<8x32xf32>
    %136 = vector.extract_strided_slice %133 {offsets = [0, 32], sizes = [8, 32], strides = [1, 1]} : vector<8x128xf32> to vector<8x32xf32>
    %137 = vector.extract_strided_slice %134 {offsets = [0, 64], sizes = [8, 32], strides = [1, 1]} : vector<8x128xf32> to vector<8x32xf32>
    %138 = vector.extract_strided_slice %133 {offsets = [0, 96], sizes = [8, 32], strides = [1, 1]} : vector<8x128xf32> to vector<8x32xf32>
    %139 = arith.mulf %136, %122 : vector<8x32xf32>
    %140 = arith.mulf %135, %137 : vector<8x32xf32>
    %141 = arith.addf %139, %140 : vector<8x32xf32>
    %142 = math.tanh %141 : vector<8x32xf32>
    %143 = arith.mulf %138, %142 : vector<8x32xf32>
    %c56 = arith.constant 56 : index
    %c0_33 = arith.constant 0 : index
    %144 = vector.load %arg8[%c56, %c0_33] : memref<64x128xf32, #tpu.memory_space<vmem>>, vector<8x128xf32>
    %145 = arith.truncf %143 : vector<8x32xf32> to vector<8x32xbf16>
    %cst_34 = arith.constant dense<0.000000e+00> : vector<8x128xf32>
    %146 = tpu.matmul %145, %8, %cst_34 {dimension_numbers = #tpu.dot_dimension_numbers<[1], [0], [0], [1], [0, 0, 1, 1], [], []>} : vector<8x32xbf16>, vector<32x128xbf16>, vector<8x128xf32> -> vector<8x128xf32>
    %147 = arith.addf %144, %146 : vector<8x128xf32>
    %148 = arith.negf %147 : vector<8x128xf32>
    %149 = math.exp %148 : vector<8x128xf32>
    %cst_35 = arith.constant 1.000000e+00 : f32
    %150 = vector.broadcast %cst_35 : f32 to vector<8x128xf32>
    %151 = arith.addf %150, %149 : vector<8x128xf32>
    %152 = arith.divf %150, %151 : vector<8x128xf32>
    %153 = math.tanh %147 : vector<8x128xf32>
    %154 = vector.extract_strided_slice %152 {offsets = [0, 0], sizes = [8, 32], strides = [1, 1]} : vector<8x128xf32> to vector<8x32xf32>
    %155 = vector.extract_strided_slice %152 {offsets = [0, 32], sizes = [8, 32], strides = [1, 1]} : vector<8x128xf32> to vector<8x32xf32>
    %156 = vector.extract_strided_slice %153 {offsets = [0, 64], sizes = [8, 32], strides = [1, 1]} : vector<8x128xf32> to vector<8x32xf32>
    %157 = vector.extract_strided_slice %152 {offsets = [0, 96], sizes = [8, 32], strides = [1, 1]} : vector<8x128xf32> to vector<8x32xf32>
    %158 = arith.mulf %155, %141 : vector<8x32xf32>
    %159 = arith.mulf %154, %156 : vector<8x32xf32>
    %160 = arith.addf %158, %159 : vector<8x32xf32>
    %161 = math.tanh %160 : vector<8x32xf32>
    %162 = arith.mulf %157, %161 : vector<8x32xf32>
    %163 = arith.truncf %162 : vector<8x32xf32> to vector<8x32xbf16>
    %c0_36 = arith.constant 0 : index
    %c0_37 = arith.constant 0 : index
    %164 = vector.load %arg4[%c0_36, %c0_37] : memref<32x128xbf16, #tpu.memory_space<vmem>>, vector<32x128xbf16>
    %cst_38 = arith.constant dense<0.000000e+00> : vector<8x128xf32>
    %165 = tpu.matmul %163, %164, %cst_38 {dimension_numbers = #tpu.dot_dimension_numbers<[1], [0], [0], [1], [0, 0, 1, 1], [], []>} : vector<8x32xbf16>, vector<32x128xbf16>, vector<8x128xf32> -> vector<8x128xf32>
    %c0_39 = arith.constant 0 : index
    %c0_40 = arith.constant 0 : index
    %166 = vector.load %arg5[%c0_39, %c0_40] : memref<1x128xf32, #tpu.memory_space<vmem>>, vector<1x128xf32>
    %167 = vector.broadcast %166 : vector<1x128xf32> to vector<8x128xf32>
    %168 = arith.addf %165, %167 : vector<8x128xf32>
    %c0_41 = arith.constant 0 : index
    %169 = memref.load %arg6[%c0_41] : memref<4xf32, #tpu.memory_space<smem>>
    %c32_42 = arith.constant 32 : index
    %c0_43 = arith.constant 0 : index
    %170 = vector.load %arg0[%c32_42, %c0_43] : memref<64x128xf32, #tpu.memory_space<vmem>>, vector<8x128xf32>
    %171 = vector.broadcast %169 : f32 to vector<8x128xf32>
    %172 = arith.mulf %171, %170 : vector<8x128xf32>
    %173 = arith.addf %168, %172 : vector<8x128xf32>
    %c1 = arith.constant 1 : index
    %174 = memref.load %arg6[%c1] : memref<4xf32, #tpu.memory_space<smem>>
    %c40_44 = arith.constant 40 : index
    %c0_45 = arith.constant 0 : index
    %175 = vector.load %arg0[%c40_44, %c0_45] : memref<64x128xf32, #tpu.memory_space<vmem>>, vector<8x128xf32>
    %176 = vector.broadcast %174 : f32 to vector<8x128xf32>
    %177 = arith.mulf %176, %175 : vector<8x128xf32>
    %178 = arith.addf %173, %177 : vector<8x128xf32>
    %c2 = arith.constant 2 : index
    %179 = memref.load %arg6[%c2] : memref<4xf32, #tpu.memory_space<smem>>
    %c48_46 = arith.constant 48 : index
    %c0_47 = arith.constant 0 : index
    %180 = vector.load %arg0[%c48_46, %c0_47] : memref<64x128xf32, #tpu.memory_space<vmem>>, vector<8x128xf32>
    %181 = vector.broadcast %179 : f32 to vector<8x128xf32>
    %182 = arith.mulf %181, %180 : vector<8x128xf32>
    %183 = arith.addf %178, %182 : vector<8x128xf32>
    %c3 = arith.constant 3 : index
    %184 = memref.load %arg6[%c3] : memref<4xf32, #tpu.memory_space<smem>>
    %c56_48 = arith.constant 56 : index
    %c0_49 = arith.constant 0 : index
    %185 = vector.load %arg0[%c56_48, %c0_49] : memref<64x128xf32, #tpu.memory_space<vmem>>, vector<8x128xf32>
    %186 = vector.broadcast %184 : f32 to vector<8x128xf32>
    %187 = arith.mulf %186, %185 : vector<8x128xf32>
    %188 = arith.addf %183, %187 : vector<8x128xf32>
    %189 = arith.negf %188 : vector<8x128xf32>
    %190 = math.exp %189 : vector<8x128xf32>
    %cst_50 = arith.constant 1.000000e+00 : f32
    %191 = vector.broadcast %cst_50 : f32 to vector<8x128xf32>
    %192 = arith.addf %191, %190 : vector<8x128xf32>
    %193 = arith.divf %191, %192 : vector<8x128xf32>
    %c0_51 = arith.constant 0 : index
    %c0_52 = arith.constant 0 : index
    %194 = vector.load %arg7[%c0_51, %c0_52] : memref<8x128xf32, #tpu.memory_space<vmem>>, vector<8x128xf32>
    tpu.vector_store %arg7[%c0_51, %c0_52], %193 {strides = array<i32>} : memref<8x128xf32, #tpu.memory_space<vmem>>, vector<8x128xf32>,
    return
  }
}

</mosaic_0001>

<bundles_post_ra>
// kernel: tpu_custom_call.1
= control target key start
LH: loop header
LB: loop body
LE: loop exit
PB: predicated region body
PF: predicated region fallthrough
CT: control target
= control target key end

     0   :  { %12 = vsyncpa [#allocation4], 0  ;;  %s1278_s0 = inlined_call_operand.hbm [shape: f32[64,128], index: 0, kind: input, shape index: {}]   ;;  %s1279_s1 = inlined_call_operand.hbm [shape: bf16[128,128], index: 1, kind: input, shape index: {}]   ;;  %s1280_s2 = inlined_call_operand.hbm [shape: bf16[32,128], index: 2, kind: input, shape index: {}]   ;;  %s1281_s3 = inlined_call_operand.vmem [shape: f32[1,128], index: 3, kind: input, shape index: {}]   ;;  %s1282_s4 = inlined_call_operand.hbm [shape: bf16[32,128], index: 4, kind: input, shape index: {}]   ;;  %s1283_s5 = inlined_call_operand.vmem [shape: f32[1,128], index: 5, kind: input, shape index: {}]   ;;  %s1284_s6 = inlined_call_operand.vmem [shape: f32[4], index: 6, kind: input, shape index: {}]   ;;  %s1285_s7 = inlined_call_operand.hbm [shape: f32[8,128], index: 7, kind: output, shape index: {}]  }
   0x1   :  { %13 = vsyncpa [#allocation8], 0 }
   0x2   :  { %14 = vsyncpa [#allocation11], 0 }
   0x3   :  { %15 = vsyncpa [#allocation6], 0  ;;  %s34_s26 = sshll.u32 %s1279_s1, 4  ;;  %s35_s26 = int_to_ptr.hbm [resolvable:$true] %s34_s26 }
   0x4   :  { %16 = vsyncpa [#allocation5], 0  ;;  %s1110_s27 = smov [#allocation7]   ;;  %s21_s8 = sshll.u32 %s1278_s0, 4  ;;  %s22_s8 = int_to_ptr.hbm [resolvable:$true] %s21_s8 }
   0x5   :  { %s36_s28 = sshll.u32 %s1110_s27, 4  ;;  %s1111_s9 = smov 64   ;;  %s37_s28 = int_to_ptr.vmem [resolvable:$true] %s36_s28 }
   0x6   :  { %s1112_s10 = smov 4   ;;  %s1113_s11 = smov [#allocation3]  }
   0x7   :  { %42 = dma.hbm_to_vmem [thread:$0]  %s35_s26, 1024, %s37_s28, [#allocation8], %s1111_s9, %s1111_s9, %s1112_s10  }
   0x8   :  { %s23_s12 = sshll.u32 %s1113_s11, 4  ;;  %s1114_s13 = smov 128   ;;  %s24_s12 = int_to_ptr.vmem [resolvable:$true] %s23_s12 }
   0x9   :  { %s1115_s1 = smov 8   ;;  %s47_s16 = sshll.u32 %s1280_s2, 4  ;;  %s48_s16 = int_to_ptr.hbm [resolvable:$true] %s47_s16 }
   0xa   :  { %29 = dma.hbm_to_vmem [thread:$0]  %s22_s8, 1024, %s24_s12, [#allocation4], %s1114_s13, %s1114_s13, %s1115_s1  }
   0xb   :  { %s1116_s17 = smov [#allocation9]   ;;  %s62_s20 = sshll.u32 %s1282_s4, 4  ;;  %s63_s20 = int_to_ptr.hbm [resolvable:$true] %s62_s20 }
   0xc   :  { %s49_s18 = sshll.u32 %s1116_s17, 4  ;;  %s1117_s21 = smov [#allocation10]   ;;  %s50_s18 = int_to_ptr.vmem [resolvable:$true] %s49_s18 }
   0xd   :  { %55 = dma.hbm_to_vmem [thread:$0]  %s48_s16, 256, %s50_s18, [#allocation8], %s1111_s9, %s1111_s9, %s1112_s10  }
   0xe   :  { %s64_s22 = sshll.u32 %s1117_s21, 4  ;;  %s78_s25 = sshll.u32 %s1284_s6, 4  ;;  %s65_s22 = int_to_ptr.vmem [resolvable:$true] %s64_s22  ;;  %s79_s25 = int_to_ptr.vmem [resolvable:$true] %s78_s25 }
   0xf   :  { %70 = dma.hbm_to_vmem [thread:$0]  %s63_s20, 256, %s65_s22, [#allocation11], %s1111_s9, %s1111_s9, %s1112_s10  }
  0x10   :  { %s1118_s2 = smov [#allocation12]  }
  0x11   :  { %81 = dma.vmem_to_smem %s79_s25, 16, %s1118_s2, [#allocation6]  }
  0x12   :  { %1100 = dma.done.wait [#allocation4], 1024  }
  0x13   :  { %1101 = vsyncadd [#allocation4], 4294966272 }
  0x14   :  { %1102 = dma.done.wait [#allocation8], 1280  }
  0x15   :  { %1103 = vsyncadd [#allocation8], 4294966016 }
  0x16   :  { %1104 = dma.done.wait [#allocation11], 256  }
  0x17   :  { %1105 = vsyncadd [#allocation11], 4294967040 }
  0x18   :  { %1106 = dma.done.wait [#allocation6], 16  }
  0x19   :  { %1107 = vsyncadd [#allocation6], 4294967280 }
  0x1a   :  { %102 = sfence }
  0x1b   :  { %v881_v0 = vld [vmem:[#allocation7 + $0x38] sm:$0xff]  ;;  %v1183_v1 = vld [vmem:[#allocation9 + $0x8] sm:$0xff]  ;;  %v880_v2 = vld [vmem:[#allocation7 + $0x30] sm:$0xff]  ;;  %v1119_v6 = vmov 0   ;;  %vm238_vm4 = vcmask 261120   ;;  %s746_s26 = sld [smem:[#allocation12]] }
  0x1c   :  { %184 = vmatpush.bf16.msra.mxu0 %v881_v0  ;;  %248 = vmatpush.bf16.msra.mxu1 %v1183_v1  ;;  %v1186_v3 = vld [vmem:[#allocation9] sm:$0xff]  ;;  %v879_v4 = vld [vmem:[#allocation7 + $0x28] sm:$0xff]  ;;  %v877_v7 = vld [vmem:[#allocation7 + $0x18] sm:$0xff]  ;;  %s870_s27 = sld [smem:[#allocation12 + $0x1]]  ;;  %s793_s12 = sshll.u32 %s1285_s7, 4  ;;  %s794_s12 = int_to_ptr.hbm [resolvable:$true] %s793_s12 }
  0x1d   :  { %307 = vmatpush.bf16.msra.mxu2 %v1183_v1  ;;  %366 = vmatpush.bf16.msra.mxu3 %v1183_v1  ;;  %v878_v5 = vld [vmem:[#allocation7 + $0x20] sm:$0xff]  ;;  %v876_v8 = vld [vmem:[#allocation7 + $0x10] sm:$0xff]  ;;  %v875_v9 = vld [vmem:[#allocation7 + $0x8] sm:$0xff]  ;;  %s871_s28 = sld [smem:[#allocation12 + $0x2]] }
  0x1e   :  { %v874_v10 = vld [vmem:[#allocation7] sm:$0xff]  ;;  %v105_v12 = vld [vmem:[#allocation3 + $0x8] sm:$0xff]  ;;  %s872_s29 = sld [smem:[#allocation12 + $0x3]] }
  0x1f   :  { %v104_v11 = vld [vmem:[#allocation3] sm:$0xff] }
  0x20   :  { %185 = vmatpush.bf16.msra.mxu0 %v880_v2  ;;  %249 = vmatpush.bf16.msra.mxu1 %v1186_v3  ;;  %v112_v13 = vpack.c.bf16 %v105_v12, %v104_v11  ;;  %v1204_v16 = vld [vmem:[%s1281_s3] ss:$0 sm:$0xff]  ;;  %s1120_s3 = smov 32  }
  0x21   :  { %308 = vmatpush.bf16.msra.mxu2 %v1186_v3  ;;  %367 = vmatpush.bf16.msra.mxu3 %v1186_v3 }
  0x23   :  { %250 = vmatmul.bf16.vlgmr.msra.gmra.mxu1 %v1119_v6  ;;  %v107_v6 = vld [vmem:[#allocation3 + $0x18] sm:$0xff] }
  0x24   :  { %425 = vmatpush.bf16.msrb.mxu1 %v1183_v1  ;;  %186 = vmatpush.bf16.msra.mxu0 %v879_v4 }
  0x25   :  { %484 = vmatpush.bf16.msrb.mxu2 %v1183_v1  ;;  %543 = vmatpush.bf16.msrb.mxu3 %v1183_v1 }
  0x28   :  { %426 = vmatpush.bf16.msrb.mxu1 %v1186_v3  ;;  %187 = vmatpush.bf16.msra.mxu0 %v878_v5  ;;  %v106_v5 = vld [vmem:[#allocation3 + $0x10] sm:$0xff] }
  0x29   :  { %485 = vmatpush.bf16.msrb.mxu2 %v1186_v3  ;;  %544 = vmatpush.bf16.msrb.mxu3 %v1186_v3 }
  0x2c   :  { %602 = vmatpush.bf16.msra.mxu1 %v1183_v1  ;;  %188 = vmatpush.bf16.msra.mxu0 %v877_v7  ;;  %v113_v7 = vpack.c.bf16 %v107_v6, %v106_v5 }
  0x30   :  { %603 = vmatpush.bf16.msra.mxu1 %v1186_v3  ;;  %189 = vmatpush.bf16.msra.mxu0 %v876_v8 }
  0x34   :  { %190 = vmatpush.bf16.msra.mxu0 %v875_v9 }
  0x38   :  { %191 = vmatpush.bf16.msra.mxu0 %v874_v10 }
  0x3b   :  { %192 = vmatmul.bf16.vlgmr.msra.gmra.mxu0 %v112_v13 }
  0x4b   :  { %197 = vmatmul.bf16.gmra.mxu0 %v113_v7 }
  0xa0   :  { %v251_v14 = vpop.f32.mrf.mxu1 }
  0xa8   :  { %v253_v15 = vpop.f32.mrf.mxu1 }
  0xb8   :  { %v193_v17 = vpop.f32.mrf.mxu0 }
  0xb9   :  { %v194_v18 = vadd.f32 %v1204_v16, %v193_v17 }
  0xbb   :  { %v255_v19 = vadd.f32 %v251_v14, %v194_v18 }
  0xbd   :  { %900 = vtanh.f32 %v255_v19  ;;  %v846_v21 = vmul.f32 -1.442695, %v255_v19 }
  0xbf   :  { %902 = vpow2.f32 %v846_v21 }
  0xc0   :  { %v195_v44 = vpop.f32.mrf.mxu0 }
  0xc1   :  { %v196_v45 = vadd.f32 %v1204_v16, %v195_v44 }
  0xc3   :  { %v901_v20 = vpop.eup %900 }
  0xc4   :  { %278 = vrot.lane.b32.xlu0 %v901_v20, %s1111_s9 }
  0xc5   :  { %v903_v22 = vpop.eup %902 }
  0xc6   :  { %v259_v23 = vadd.f32 1.0, %v903_v22 }
  0xc8   :  { %904 = vrcp.f32 %v259_v23  ;;  %v271_v29 = vand.u32 2147483648, %v259_v23  ;;  %vm265_vm1 = vweird.f32 %v259_v23  ;;  %v269_v30 = vand.u32 2147483647, %v259_v23  ;;  %v198_v12 = vpop.f32.mrf.mxu0 }
  0xc9   :  { %v199_v13 = vadd.f32 %v1204_v16, %v198_v12 }
  0xca   :  { %v272_v32 = vor.u32 1.1754944e-38, %v271_v29  ;;  %vm270_vm3 = vcmp.eq.f32.partialorder %v269_v30, 8.507059e+37 }
  0xce   :  { %v905_v24 = vpop.eup %904 }
  0xcf   :  { %v261_v25 = vmul.f32 %v905_v24, %v259_v23  ;;  %vm266_vm0 = vweird.f32 %v905_v24 }
  0xd0   :  { %vm267_vm2 = vmor %vm265_vm1, %vm266_vm0 }
  0xd1   :  { %v262_v26 = vsub.f32 1.0, %v261_v25 }
  0xd3   :  { %v263_v27 = vmul.f32 %v905_v24, %v262_v26 }
  0xd5   :  { %v264_v28 = vadd.f32 %v905_v24, %v263_v27 }
  0xd7   :  { %v268_v31 = vsel %vm267_vm2, %v905_v24, %v264_v28 }
  0xd8   :  { %v273_v34 = vsel %vm270_vm3, %v272_v32, %v268_v31 }
  0xd9   :  { %v276_v36 = vmul.f32 0.0, %v273_v34 }
 0x136   :  { %v279_v33 = vpop.permute.xlu0 %278 }
 0x137   :  { %v281_v35 = vmul.f32 %v279_v33, %v273_v34 }
 0x139   :  { %283 = vrot.lane.b32.xlu0 %v281_v35, %s1120_s3 }
 0x1ab   :  { %v284_v37 = vpop.permute.xlu0 %283 }
 0x1ac   :  { %v286_v38 = vadd.f32 %v284_v37, %v276_v36 }
 0x1ae   :  { %906 = vtanh.f32 %v286_v38 }
 0x1b4   :  { %v907_v39 = vpop.eup %906 }
 0x1b5   :  { %289 = vrot.lane.b32.xlu1 %v907_v39, %s1111_s9 }
 0x227   :  { %v290_v40 = vpop.permute.xlu1 %289 }
 0x228   :  { %v292_v41 = vmul.f32 %v290_v40, %v273_v34 }
 0x22a   :  { %v294_v42 = vpack.c.bf16 %v292_v41, %v292_v41 }
 0x22c   :  { %296 = vrot.lane.b32.xlu1 %v294_v42, %s1120_s3  ;;  %v200_v42 = vpop.f32.mrf.mxu0 }
 0x29e   :  { %v297_v43 = vpop.permute.xlu1 %296 }
 0x29f   :  { %847 = vmatmul.msk.bf16.vlgmr.msra.gmra.mxu2 %vm238_vm4, %v297_v43  ;;  %v201_v43 = vadd.f32 %v1204_v16, %v200_v42 }
 0x2a0   :  { %661 = vmatpush.bf16.msra.mxu2 %v1183_v1 }
 0x2a4   :  { %662 = vmatpush.bf16.msra.mxu2 %v1186_v3 }
 0x322   :  { %v310_v46 = vpop.f32.mrf.mxu2 }
 0x323   :  { %v314_v47 = vadd.f32 %v310_v46, %v196_v45 }
 0x325   :  { %908 = vtanh.f32 %v314_v47  ;;  %v848_v50 = vmul.f32 -1.442695, %v314_v47 }
 0x327   :  { %910 = vpow2.f32 %v848_v50 }
 0x32a   :  { %v312_v48 = vpop.f32.mrf.mxu2 }
 0x32b   :  { %v909_v49 = vpop.eup %908 }
 0x32c   :  { %337 = vrot.lane.b32.xlu2 %v909_v49, %s1111_s9 }
 0x32d   :  { %v911_v51 = vpop.eup %910 }
 0x32e   :  { %v318_v52 = vadd.f32 1.0, %v911_v51 }
 0x330   :  { %912 = vrcp.f32 %v318_v52  ;;  %v330_v58 = vand.u32 2147483648, %v318_v52  ;;  %vm324_vm6 = vweird.f32 %v318_v52  ;;  %v328_v59 = vand.u32 2147483647, %v318_v52 }
 0x332   :  { %v331_v61 = vor.u32 1.1754944e-38, %v330_v58  ;;  %vm329_vm8 = vcmp.eq.f32.partialorder %v328_v59, 8.507059e+37 }
 0x336   :  { %v913_v53 = vpop.eup %912 }
 0x337   :  { %v320_v54 = vmul.f32 %v913_v53, %v318_v52  ;;  %vm325_vm5 = vweird.f32 %v913_v53 }
 0x338   :  { %vm326_vm7 = vmor %vm324_vm6, %vm325_vm5 }
 0x339   :  { %v321_v55 = vsub.f32 1.0, %v320_v54 }
 0x33b   :  { %v322_v56 = vmul.f32 %v913_v53, %v321_v55 }
 0x33d   :  { %v323_v57 = vadd.f32 %v913_v53, %v322_v56 }
 0x33f   :  { %v327_v60 = vsel %vm326_vm7, %v913_v53, %v323_v57 }
 0x340   :  { %v332_v63 = vsel %vm329_vm8, %v331_v61, %v327_v60 }
 0x341   :  { %v335_v1 = vmul.f32 %v332_v63, %v286_v38 }
 0x386   :  { %v338_v62 = vpop.permute.xlu2 %337 }
 0x387   :  { %v340_v0 = vmul.f32 %v338_v62, %v332_v63 }
 0x389   :  { %342 = vrot.lane.b32.xlu2 %v340_v0, %s1120_s3 }
 0x3e3   :  { %v343_v2 = vpop.permute.xlu2 %342 }
 0x3e4   :  { %v345_v3 = vadd.f32 %v343_v2, %v335_v1 }
 0x3e6   :  { %914 = vtanh.f32 %v345_v3 }
 0x3ec   :  { %v915_v4 = vpop.eup %914 }
 0x3ed   :  { %348 = vrot.lane.b32.xlu0 %v915_v4, %s1111_s9  ;;  %v1232_v4 = vld [vmem:[#allocation3 + $0x28] sm:$0xff] }
 0x45f   :  { %v349_v8 = vpop.permute.xlu0 %348 }
 0x460   :  { %v351_v9 = vmul.f32 %v349_v8, %v332_v63 }
 0x462   :  { %v353_v10 = vpack.c.bf16 %v351_v9, %v351_v9 }
 0x464   :  { %355 = vrot.lane.b32.xlu1 %v353_v10, %s1120_s3 }
 0x4d6   :  { %v356_v11 = vpop.permute.xlu1 %355 }
 0x4d7   :  { %849 = vmatmul.msk.bf16.vlgmr.msra.gmra.mxu3 %vm238_vm4, %v356_v11 }
 0x55a   :  { %v369_v14 = vpop.f32.mrf.mxu3 }
 0x55b   :  { %v373_v15 = vadd.f32 %v369_v14, %v199_v13 }
 0x55d   :  { %916 = vtanh.f32 %v373_v15  ;;  %v850_v19 = vmul.f32 -1.442695, %v373_v15 }
 0x55f   :  { %918 = vpow2.f32 %v850_v19 }
 0x562   :  { %v371_v17 = vpop.f32.mrf.mxu3 }
 0x563   :  { %v917_v18 = vpop.eup %916 }
 0x564   :  { %396 = vrot.lane.b32.xlu2 %v917_v18, %s1111_s9 }
 0x565   :  { %v919_v20 = vpop.eup %918 }
 0x566   :  { %v377_v21 = vadd.f32 1.0, %v919_v20 }
 0x568   :  { %920 = vrcp.f32 %v377_v21  ;;  %v389_v27 = vand.u32 2147483648, %v377_v21  ;;  %vm383_vm10 = vweird.f32 %v377_v21  ;;  %v387_v28 = vand.u32 2147483647, %v377_v21 }
 0x56a   :  { %v390_v30 = vor.u32 1.1754944e-38, %v389_v27  ;;  %vm388_vm12 = vcmp.eq.f32.partialorder %v387_v28, 8.507059e+37 }
 0x56e   :  { %v921_v22 = vpop.eup %920 }
 0x56f   :  { %v379_v23 = vmul.f32 %v921_v22, %v377_v21  ;;  %vm384_vm9 = vweird.f32 %v921_v22 }
 0x570   :  { %vm385_vm11 = vmor %vm383_vm10, %vm384_vm9 }
 0x571   :  { %v380_v24 = vsub.f32 1.0, %v379_v23 }
 0x573   :  { %v381_v25 = vmul.f32 %v921_v22, %v380_v24 }
 0x575   :  { %v382_v26 = vadd.f32 %v921_v22, %v381_v25 }
 0x577   :  { %v386_v29 = vsel %vm385_vm11, %v921_v22, %v382_v26 }
 0x578   :  { %v391_v32 = vsel %vm388_vm12, %v390_v30, %v386_v29 }
 0x579   :  { %v394_v34 = vmul.f32 %v391_v32, %v345_v3  ;;  %v1230_v3 = vld [vmem:[#allocation3 + $0x20] sm:$0xff] }
 0x57a   :  { %v114_v5 = vpack.c.bf16 %v1232_v4, %v1230_v3 }
 0x57c   :  { %202 = vmatmul.bf16.gmra.mxu0 %v114_v5 }
 0x5be   :  { %v397_v31 = vpop.permute.xlu2 %396 }
 0x5bf   :  { %v399_v33 = vmul.f32 %v397_v31, %v391_v32 }
 0x5c1   :  { %401 = vrot.lane.b32.xlu0 %v399_v33, %s1120_s3 }
 0x5f9   :  { %v203_v10 = vpop.f32.mrf.mxu0 }
 0x5fa   :  { %v204_v11 = vadd.f32 %v1204_v16, %v203_v10 }
 0x633   :  { %v402_v35 = vpop.permute.xlu0 %401 }
 0x634   :  { %v404_v36 = vadd.f32 %v402_v35, %v394_v34 }
 0x636   :  { %922 = vtanh.f32 %v404_v36 }
 0x63c   :  { %v923_v37 = vpop.eup %922 }
 0x63d   :  { %407 = vrot.lane.b32.xlu1 %v923_v37, %s1111_s9 }
 0x6af   :  { %v408_v38 = vpop.permute.xlu1 %407 }
 0x6b0   :  { %v410_v39 = vmul.f32 %v408_v38, %v391_v32 }
 0x6b2   :  { %v412_v40 = vpack.c.bf16 %v410_v39, %v410_v39 }
 0x6b4   :  { %414 = vrot.lane.b32.xlu2 %v412_v40, %s1120_s3  ;;  %v205_v40 = vpop.f32.mrf.mxu0 }
 0x70e   :  { %v415_v41 = vpop.permute.xlu2 %414 }
 0x70f   :  { %851 = vmatmul.msk.bf16.vlgmr.msrb.gmra.mxu1 %vm238_vm4, %v415_v41  ;;  %v206_v41 = vadd.f32 %v1204_v16, %v205_v40 }
 0x78c   :  { %v428_v44 = vpop.f32.mrf.mxu1 }
 0x78d   :  { %v432_v45 = vadd.f32 %v428_v44, %v201_v43 }
 0x78f   :  { %924 = vtanh.f32 %v432_v45  ;;  %v852_v48 = vmul.f32 -1.442695, %v432_v45 }
 0x791   :  { %926 = vpow2.f32 %v852_v48 }
 0x794   :  { %v430_v46 = vpop.f32.mrf.mxu1 }
 0x795   :  { %v925_v47 = vpop.eup %924 }
 0x796   :  { %455 = vrot.lane.b32.xlu0 %v925_v47, %s1111_s9 }
 0x797   :  { %v927_v49 = vpop.eup %926 }
 0x798   :  { %v436_v50 = vadd.f32 1.0, %v927_v49 }
 0x79a   :  { %928 = vrcp.f32 %v436_v50  ;;  %v448_v56 = vand.u32 2147483648, %v436_v50  ;;  %vm442_vm14 = vweird.f32 %v436_v50  ;;  %v446_v57 = vand.u32 2147483647, %v436_v50 }
 0x79c   :  { %v449_v59 = vor.u32 1.1754944e-38, %v448_v56  ;;  %vm447_vm0 = vcmp.eq.f32.partialorder %v446_v57, 8.507059e+37 }
 0x7a0   :  { %v929_v51 = vpop.eup %928 }
 0x7a1   :  { %v438_v52 = vmul.f32 %v929_v51, %v436_v50  ;;  %vm443_vm13 = vweird.f32 %v929_v51 }
 0x7a2   :  { %vm444_vm15 = vmor %vm442_vm14, %vm443_vm13 }
 0x7a3   :  { %v439_v53 = vsub.f32 1.0, %v438_v52 }
 0x7a5   :  { %v440_v54 = vmul.f32 %v929_v51, %v439_v53 }
 0x7a7   :  { %v441_v55 = vadd.f32 %v929_v51, %v440_v54 }
 0x7a9   :  { %v445_v58 = vsel %vm444_vm15, %v929_v51, %v441_v55 }
 0x7aa   :  { %v450_v61 = vsel %vm447_vm0, %v449_v59, %v445_v58 }
 0x7ab   :  { %v453_v63 = vmul.f32 %v450_v61, %v404_v36 }
 0x808   :  { %v456_v60 = vpop.permute.xlu0 %455 }
 0x809   :  { %v458_v62 = vmul.f32 %v456_v60, %v450_v61 }
 0x80b   :  { %460 = vrot.lane.b32.xlu1 %v458_v62, %s1120_s3 }
 0x87d   :  { %v461_v0 = vpop.permute.xlu1 %460 }
 0x87e   :  { %v463_v1 = vadd.f32 %v461_v0, %v453_v63 }
 0x880   :  { %930 = vtanh.f32 %v463_v1 }
 0x886   :  { %v931_v2 = vpop.eup %930 }
 0x887   :  { %466 = vrot.lane.b32.xlu2 %v931_v2, %s1111_s9  ;;  %v1250_v2 = vld [vmem:[#allocation3 + $0x38] sm:$0xff] }
 0x8e1   :  { %v467_v6 = vpop.permute.xlu2 %466 }
 0x8e2   :  { %v469_v7 = vmul.f32 %v467_v6, %v450_v61 }
 0x8e4   :  { %v471_v8 = vpack.c.bf16 %v469_v7, %v469_v7 }
 0x8e6   :  { %473 = vrot.lane.b32.xlu0 %v471_v8, %s1120_s3 }
 0x958   :  { %v474_v9 = vpop.permute.xlu0 %473 }
 0x959   :  { %853 = vmatmul.msk.bf16.vlgmr.msrb.gmra.mxu2 %vm238_vm4, %v474_v9 }
 0x9dc   :  { %v487_v12 = vpop.f32.mrf.mxu2 }
 0x9dd   :  { %v491_v13 = vadd.f32 %v487_v12, %v204_v11 }
 0x9df   :  { %932 = vtanh.f32 %v491_v13  ;;  %v854_v17 = vmul.f32 -1.442695, %v491_v13 }
 0x9e1   :  { %934 = vpow2.f32 %v854_v17 }
 0x9e4   :  { %v489_v14 = vpop.f32.mrf.mxu2 }
 0x9e5   :  { %v933_v15 = vpop.eup %932 }
 0x9e6   :  { %514 = vrot.lane.b32.xlu1 %v933_v15, %s1111_s9 }
 0x9e7   :  { %v935_v18 = vpop.eup %934 }
 0x9e8   :  { %v495_v19 = vadd.f32 1.0, %v935_v18 }
 0x9ea   :  { %936 = vrcp.f32 %v495_v19  ;;  %v507_v25 = vand.u32 2147483648, %v495_v19  ;;  %vm501_vm2 = vweird.f32 %v495_v19  ;;  %v505_v26 = vand.u32 2147483647, %v495_v19 }
 0x9ec   :  { %v508_v28 = vor.u32 1.1754944e-38, %v507_v25  ;;  %vm506_vm5 = vcmp.eq.f32.partialorder %v505_v26, 8.507059e+37 }
 0x9f0   :  { %v937_v20 = vpop.eup %936 }
 0x9f1   :  { %v497_v21 = vmul.f32 %v937_v20, %v495_v19  ;;  %vm502_vm1 = vweird.f32 %v937_v20 }
 0x9f2   :  { %vm503_vm3 = vmor %vm501_vm2, %vm502_vm1 }
 0x9f3   :  { %v498_v22 = vsub.f32 1.0, %v497_v21 }
 0x9f5   :  { %v499_v23 = vmul.f32 %v937_v20, %v498_v22 }
 0x9f7   :  { %v500_v24 = vadd.f32 %v937_v20, %v499_v23 }
 0x9f9   :  { %v504_v27 = vsel %vm503_vm3, %v937_v20, %v500_v24 }
 0x9fa   :  { %v509_v30 = vsel %vm506_vm5, %v508_v28, %v504_v27 }
 0x9fb   :  { %v512_v32 = vmul.f32 %v509_v30, %v463_v1  ;;  %v1248_v1 = vld [vmem:[#allocation3 + $0x30] sm:$0xff] }
 0x9fc   :  { %v115_v5 = vpack.c.bf16 %v1250_v2, %v1248_v1 }
 0x9fe   :  { %207 = vmatmul.bf16.gmra.mxu0 %v115_v5  ;;  %v884_v5 = vld [vmem:[#allocation10] sm:$0xff] }
 0xa58   :  { %v515_v29 = vpop.permute.xlu1 %514 }
 0xa59   :  { %v517_v31 = vmul.f32 %v515_v29, %v509_v30 }
 0xa5b   :  { %519 = vrot.lane.b32.xlu2 %v517_v31, %s1120_s3 }
 0xa7b   :  { %v208_v10 = vpop.f32.mrf.mxu0 }
 0xa7c   :  { %v209_v11 = vadd.f32 %v1204_v16, %v208_v10  ;;  %v748_v10 = vstv %s746_s26 }
 0xa83   :  { %v210_v40 = vpop.f32.mrf.mxu0 }
 0xab5   :  { %v520_v33 = vpop.permute.xlu2 %519 }
 0xab6   :  { %v522_v34 = vadd.f32 %v520_v33, %v512_v32 }
 0xab8   :  { %938 = vtanh.f32 %v522_v34 }
 0xabe   :  { %v939_v35 = vpop.eup %938 }
 0xabf   :  { %525 = vrot.lane.b32.xlu0 %v939_v35, %s1111_s9 }
 0xb31   :  { %v526_v36 = vpop.permute.xlu0 %525 }
 0xb32   :  { %v528_v37 = vmul.f32 %v526_v36, %v509_v30 }
 0xb34   :  { %v530_v38 = vpack.c.bf16 %v528_v37, %v528_v37 }
 0xb36   :  { %532 = vrot.lane.b32.xlu1 %v530_v38, %s1120_s3 }
 0xba8   :  { %v533_v39 = vpop.permute.xlu1 %532 }
 0xba9   :  { %855 = vmatmul.msk.bf16.vlgmr.msrb.gmra.mxu3 %vm238_vm4, %v533_v39 }
 0xc2c   :  { %v546_v42 = vpop.f32.mrf.mxu3 }
 0xc2d   :  { %v550_v43 = vadd.f32 %v546_v42, %v206_v41  ;;  %v211_v41 = vadd.f32 %v1204_v16, %v210_v40 }
 0xc2f   :  { %940 = vtanh.f32 %v550_v43  ;;  %v856_v46 = vmul.f32 -1.442695, %v550_v43 }
 0xc31   :  { %942 = vpow2.f32 %v856_v46 }
 0xc34   :  { %v548_v44 = vpop.f32.mrf.mxu3 }
 0xc35   :  { %v941_v45 = vpop.eup %940 }
 0xc36   :  { %573 = vrot.lane.b32.xlu2 %v941_v45, %s1111_s9 }
 0xc37   :  { %v943_v47 = vpop.eup %942 }
 0xc38   :  { %v554_v48 = vadd.f32 1.0, %v943_v47 }
 0xc3a   :  { %944 = vrcp.f32 %v554_v48  ;;  %v566_v54 = vand.u32 2147483648, %v554_v48  ;;  %vm560_vm7 = vweird.f32 %v554_v48  ;;  %v564_v55 = vand.u32 2147483647, %v554_v48 }
 0xc3c   :  { %v567_v57 = vor.u32 1.1754944e-38, %v566_v54  ;;  %vm565_vm9 = vcmp.eq.f32.partialorder %v564_v55, 8.507059e+37 }
 0xc40   :  { %v945_v49 = vpop.eup %944 }
 0xc41   :  { %v556_v50 = vmul.f32 %v945_v49, %v554_v48  ;;  %vm561_vm6 = vweird.f32 %v945_v49 }
 0xc42   :  { %vm562_vm8 = vmor %vm560_vm7, %vm561_vm6 }
 0xc43   :  { %v557_v51 = vsub.f32 1.0, %v556_v50 }
 0xc45   :  { %v558_v52 = vmul.f32 %v945_v49, %v557_v51 }
 0xc47   :  { %v559_v53 = vadd.f32 %v945_v49, %v558_v52 }
 0xc49   :  { %v563_v56 = vsel %vm562_vm8, %v945_v49, %v559_v53 }
 0xc4a   :  { %v568_v59 = vsel %vm565_vm9, %v567_v57, %v563_v56 }
 0xc4b   :  { %v571_v61 = vmul.f32 %v568_v59, %v522_v34 }
 0xc90   :  { %v574_v58 = vpop.permute.xlu2 %573 }
 0xc91   :  { %v576_v60 = vmul.f32 %v574_v58, %v568_v59 }
 0xc93   :  { %578 = vrot.lane.b32.xlu0 %v576_v60, %s1120_s3 }
 0xd05   :  { %v579_v62 = vpop.permute.xlu0 %578 }
 0xd06   :  { %v581_v63 = vadd.f32 %v579_v62, %v571_v61 }
 0xd08   :  { %946 = vtanh.f32 %v581_v63 }
 0xd0e   :  { %v947_v0 = vpop.eup %946 }
 0xd0f   :  { %584 = vrot.lane.b32.xlu1 %v947_v0, %s1111_s9  ;;  %v885_v0 = vld [vmem:[#allocation10 + $0x8] sm:$0xff] }
 0xd10   :  { %739 = vmatpush.bf16.msra.mxu3 %v885_v0 }
 0xd14   :  { %740 = vmatpush.bf16.msra.mxu3 %v884_v5 }
 0xd81   :  { %v585_v6 = vpop.permute.xlu1 %584 }
 0xd82   :  { %v587_v7 = vmul.f32 %v585_v6, %v568_v59 }
 0xd84   :  { %v589_v8 = vpack.c.bf16 %v587_v7, %v587_v7 }
 0xd86   :  { %591 = vrot.lane.b32.xlu2 %v589_v8, %s1120_s3 }
 0xde0   :  { %v592_v9 = vpop.permute.xlu2 %591 }
 0xde1   :  { %857 = vmatmul.msk.bf16.vlgmr.msra.gmra.mxu1 %vm238_vm4, %v592_v9 }
 0xe5e   :  { %v605_v12 = vpop.f32.mrf.mxu1 }
 0xe5f   :  { %v609_v13 = vadd.f32 %v605_v12, %v209_v11  ;;  %v899_v11 = vld [vmem:[%s1283_s5] ss:$0 sm:$0xff]  ;;  %v753_v12 = vstv %s870_s27  ;;  %s1121_s5 = smov [#allocation13]  }
 0xe61   :  { %948 = vtanh.f32 %v609_v13  ;;  %v858_v17 = vmul.f32 -1.442695, %v609_v13  ;;  %v749_v13 = vmul.f32 %v748_v10, %v1230_v3 }
 0xe63   :  { %950 = vpow2.f32 %v858_v17 }
 0xe66   :  { %v607_v14 = vpop.f32.mrf.mxu1 }
 0xe67   :  { %v949_v15 = vpop.eup %948 }
 0xe68   :  { %632 = vrot.lane.b32.xlu0 %v949_v15, %s1111_s9  ;;  %v758_v15 = vstv %s871_s28 }
 0xe69   :  { %v951_v18 = vpop.eup %950 }
 0xe6a   :  { %v613_v19 = vadd.f32 1.0, %v951_v18  ;;  %v754_v18 = vmul.f32 %v753_v12, %v1232_v4 }
 0xe6c   :  { %952 = vrcp.f32 %v613_v19  ;;  %v625_v25 = vand.u32 2147483648, %v613_v19  ;;  %vm619_vm11 = vweird.f32 %v613_v19  ;;  %v623_v26 = vand.u32 2147483647, %v613_v19 }
 0xe6e   :  { %v626_v28 = vor.u32 1.1754944e-38, %v625_v25  ;;  %vm624_vm13 = vcmp.eq.f32.partialorder %v623_v26, 8.507059e+37 }
 0xe72   :  { %v953_v20 = vpop.eup %952 }
 0xe73   :  { %v615_v21 = vmul.f32 %v953_v20, %v613_v19  ;;  %vm620_vm10 = vweird.f32 %v953_v20  ;;  %v763_v19 = vstv %s872_s29 }
 0xe74   :  { %vm621_vm12 = vmor %vm619_vm11, %vm620_vm10 }
 0xe75   :  { %v616_v22 = vsub.f32 1.0, %v615_v21  ;;  %v759_v21 = vmul.f32 %v758_v15, %v1248_v1 }
 0xe77   :  { %v617_v23 = vmul.f32 %v953_v20, %v616_v22 }
 0xe79   :  { %v618_v24 = vadd.f32 %v953_v20, %v617_v23  ;;  %v764_v23 = vmul.f32 %v763_v19, %v1250_v2 }
 0xe7b   :  { %v622_v27 = vsel %vm621_vm12, %v953_v20, %v618_v24 }
 0xe7c   :  { %v627_v30 = vsel %vm624_vm13, %v626_v28, %v622_v27 }
 0xe7d   :  { %v630_v32 = vmul.f32 %v627_v30, %v581_v63 }
 0xeda   :  { %v633_v29 = vpop.permute.xlu0 %632 }
 0xedb   :  { %v635_v31 = vmul.f32 %v633_v29, %v627_v30 }
 0xedd   :  { %637 = vrot.lane.b32.xlu1 %v635_v31, %s1120_s3 }
 0xf4f   :  { %v638_v33 = vpop.permute.xlu1 %637 }
 0xf50   :  { %v640_v34 = vadd.f32 %v638_v33, %v630_v32 }
 0xf52   :  { %954 = vtanh.f32 %v640_v34 }
 0xf58   :  { %v955_v35 = vpop.eup %954 }
 0xf59   :  { %643 = vrot.lane.b32.xlu2 %v955_v35, %s1111_s9 }
 0xfb3   :  { %v644_v36 = vpop.permute.xlu2 %643 }
 0xfb4   :  { %v646_v37 = vmul.f32 %v644_v36, %v627_v30 }
 0xfb6   :  { %v648_v38 = vpack.c.bf16 %v646_v37, %v646_v37 }
 0xfb8   :  { %650 = vrot.lane.b32.xlu0 %v648_v38, %s1120_s3 }
0x102a   :  { %v651_v39 = vpop.permute.xlu0 %650 }
0x102b   :  { %859 = vmatmul.msk.bf16.vlgmr.msra.gmra.mxu2 %vm238_vm4, %v651_v39 }
0x10ae   :  { %v664_v42 = vpop.f32.mrf.mxu2 }
0x10af   :  { %v668_v43 = vadd.f32 %v664_v42, %v211_v41 }
0x10b1   :  { %956 = vtanh.f32 %v668_v43  ;;  %v860_v46 = vmul.f32 -1.442695, %v668_v43 }
0x10b3   :  { %958 = vpow2.f32 %v860_v46 }
0x10b6   :  { %v666_v44 = vpop.f32.mrf.mxu2 }
0x10b7   :  { %v957_v45 = vpop.eup %956 }
0x10b8   :  { %691 = vrot.lane.b32.xlu1 %v957_v45, %s1111_s9 }
0x10b9   :  { %v959_v47 = vpop.eup %958 }
0x10ba   :  { %v672_v48 = vadd.f32 1.0, %v959_v47 }
0x10bc   :  { %960 = vrcp.f32 %v672_v48  ;;  %v684_v54 = vand.u32 2147483648, %v672_v48  ;;  %vm678_vm15 = vweird.f32 %v672_v48  ;;  %v682_v16 = vand.u32 2147483647, %v672_v48 }
0x10be   :  { %v685_v56 = vor.u32 1.1754944e-38, %v684_v54  ;;  %vm683_vm1 = vcmp.eq.f32.partialorder %v682_v16, 8.507059e+37 }
0x10c2   :  { %v961_v49 = vpop.eup %960 }
0x10c3   :  { %v674_v50 = vmul.f32 %v961_v49, %v672_v48  ;;  %vm679_vm14 = vweird.f32 %v961_v49 }
0x10c4   :  { %vm680_vm0 = vmor %vm678_vm15, %vm679_vm14 }
0x10c5   :  { %v675_v51 = vsub.f32 1.0, %v674_v50 }
0x10c7   :  { %v676_v52 = vmul.f32 %v961_v49, %v675_v51 }
0x10c9   :  { %v677_v53 = vadd.f32 %v961_v49, %v676_v52 }
0x10cb   :  { %v681_v55 = vsel %vm680_vm0, %v961_v49, %v677_v53 }
0x10cc   :  { %v686_v58 = vsel %vm683_vm1, %v685_v56, %v681_v55 }
0x10cd   :  { %v689_v60 = vmul.f32 %v686_v58, %v640_v34 }
0x112a   :  { %v692_v57 = vpop.permute.xlu1 %691 }
0x112b   :  { %v694_v59 = vmul.f32 %v692_v57, %v686_v58 }
0x112d   :  { %696 = vrot.lane.b32.xlu2 %v694_v59, %s1120_s3 }
0x1187   :  { %v697_v61 = vpop.permute.xlu2 %696 }
0x1188   :  { %v699_v62 = vadd.f32 %v697_v61, %v689_v60 }
0x118a   :  { %962 = vtanh.f32 %v699_v62 }
0x1190   :  { %v963_v63 = vpop.eup %962 }
0x1191   :  { %702 = vrot.lane.b32.xlu0 %v963_v63, %s1111_s9  ;;  %s791_s9 = sshll.u32 %s1121_s5, 4  ;;  %s792_s9 = int_to_ptr.vmem [resolvable:$true] %s791_s9 }
0x1203   :  { %v703_v6 = vpop.permute.xlu0 %702 }
0x1204   :  { %v705_v7 = vmul.f32 %v703_v6, %v686_v58 }
0x1206   :  { %v706_v8 = vpack.c.bf16 %v705_v7, %v705_v7 }
0x1208   :  { %716 = vrot.lane.b32.xlu1 %v706_v8, %s1120_s3 }
0x127a   :  { %v717_v9 = vpop.permute.xlu1 %716 }
0x127b   :  { %869 = vmatmul.msk.bf16.vlgmr.msra.gmra.mxu3 %vm238_vm4, %v717_v9 }
0x12fe   :  { %v742_v14 = vpop.f32.mrf.mxu3 }
0x12ff   :  { %v743_v17 = vadd.f32 %v899_v11, %v742_v14 }
0x1301   :  { %v750_v20 = vadd.f32 %v749_v13, %v743_v17 }
0x1303   :  { %v755_v22 = vadd.f32 %v754_v18, %v750_v20 }
0x1305   :  { %v760_v24 = vadd.f32 %v759_v21, %v755_v22 }
0x1306   :  { %v744_v25 = vpop.f32.mrf.mxu3 }
0x1307   :  { %v765_v26 = vadd.f32 %v764_v23, %v760_v24 }
0x1309   :  { %v873_v27 = vmul.f32 -1.442695, %v765_v26 }
0x130b   :  { %964 = vpow2.f32 %v873_v27 }
0x1311   :  { %v965_v28 = vpop.eup %964 }
0x1312   :  { %v769_v29 = vadd.f32 1.0, %v965_v28 }
0x1314   :  { %966 = vrcp.f32 %v769_v29  ;;  %v781_v32 = vand.u32 2147483648, %v769_v29  ;;  %v779_v33 = vand.u32 2147483647, %v769_v29  ;;  %vm775_vm2 = vweird.f32 %v769_v29 }
0x1316   :  { %v782_v2 = vor.u32 1.1754944e-38, %v781_v32  ;;  %vm780_vm5 = vcmp.eq.f32.partialorder %v779_v33, 8.507059e+37 }
0x131a   :  { %v967_v3 = vpop.eup %966 }
0x131b   :  { %v771_v30 = vmul.f32 %v967_v3, %v769_v29  ;;  %vm776_vm4 = vweird.f32 %v967_v3 }
0x131c   :  { %vm777_vm3 = vmor %vm775_vm2, %vm776_vm4 }
0x131d   :  { %v772_v31 = vsub.f32 1.0, %v771_v30 }
0x131f   :  { %v773_v4 = vmul.f32 %v967_v3, %v772_v31 }
0x1321   :  { %v774_v1 = vadd.f32 %v967_v3, %v773_v4 }
0x1323   :  { %v778_v34 = vsel %vm777_vm3, %v967_v3, %v774_v1 }
0x1324   :  { %v783_v35 = vsel %vm780_vm5, %v782_v2, %v778_v34 }
0x1325   :  { %785 = vst [vmem:[#allocation13] sm:$0xff] %v783_v35 }
0x1326   :  { %796 = dma.vmem_to_hbm [thread:$0]  %s792_s9, 128, %s794_s12, [#allocation5]  }
0x1327   :  { %1108 = dma.done.wait [#allocation5], 128  }
0x1328   :  { %1109 = vsyncadd [#allocation5], 4294967168 }
0x1329   :  { %801 = vsyncpa [#allocation4], 1 }
0x132a   :  { %802 = vsyncpa [#allocation8], 1 }
0x132b   :  { %803 = vsyncpa [#allocation11], 1 }
0x132c   :  { %804 = vsyncpa [#allocation5], 1 }
0x132d   :  { %805 = vsyncpa [#allocation6], 1 }

</bundles_post_ra>
